<compile_context>
chip_gen: v6e
topology: v6e:2x2x1
jax: 0.10.0
libtpu: 0.0.40
codegen_flags: <defaults>
</compile_context>

<pallas_src>
import jax
import jax.numpy as jnp
from jax import lax
from jax.experimental import pallas as pl
from jax.experimental.pallas import tpu as pltpu


def _dense_kernel(x_ref, w_ref, o_ref, acc_ref):
    """Computes one (tm, tn) output tile, accumulating over the K grid axis."""

    @pl.when(pl.program_id(2) == 0)
    def _init():
        acc_ref[...] = jnp.zeros_like(acc_ref)

    # x tile: (tm, tk), weight tile: (tn, tk)  (native nn.Linear layout).
    # Contract both last dims -> (tm, tn) on the MXU with f32 accumulation.
    acc_ref[...] += lax.dot_general(
        x_ref[...],
        w_ref[...],
        dimension_numbers=(((1,), (1,)), ((), ())),
        preferred_element_type=jnp.float32,
    )

    @pl.when(pl.program_id(2) == pl.num_programs(2) - 1)
    def _finalize():
        # Cast once at the end -> inner K loop stays pure MXU + accumulate.
        o_ref[...] = acc_ref[...].astype(o_ref.dtype)


def _pick_mn_tile(size, target=256):
    # Small dims: use the full dim (block equal to full array dim is always legal).
    # Large dims: 256 tiles (multiple of (8, 128); matches the v6e/v7x 256x256 MXU).
    # Ragged last blocks in M/N are safe: OOB output elements are simply not written.
    return size if size <= target else target


def _pick_k_tile(k):
    # K must tile exactly (garbage in an OOB K block would corrupt valid outputs).
    for cand in (1024, 512, 256, 128):
        if k >= cand and k % cand == 0:
            return cand
    return k  # single K block (== full array dim, satisfies layout rules)


def dense4to1(x, weight, *, tm=None, tn=None, tk=None):
    """y = x @ weight.T, matching nn.Linear(ffn_dim, dim, bias=False).

    x:      [..., ffn_dim]
    weight: [dim, ffn_dim]   (native PyTorch Linear layout, no transpose needed)
    returns [..., dim]
    """
    ffn_dim = x.shape[-1]
    dim = weight.shape[0]
    assert weight.shape[1] == ffn_dim

    lead_shape = x.shape[:-1]
    m = 1
    for s in lead_shape:
        m *= s
    x2d = x.reshape(m, ffn_dim)

    tm = _pick_mn_tile(m) if tm is None else tm
    tn = _pick_mn_tile(dim) if tn is None else tn
    tk = _pick_k_tile(ffn_dim) if tk is None else tk

    grid_m = pl.cdiv(m, tm)
    grid_n = pl.cdiv(dim, tn)
    grid_k = ffn_dim // tk  # exact by construction of _pick_k_tile

    # Grid order (N, M, K): K (reduction) innermost. When grid_k == 1 the weight
    # block index is constant across the inner M loop, so Pallas skips the
    # redundant weight DMA (weight-stationary for M >> dim workloads).
    grid = (grid_n, grid_m, grid_k)

    out_itemsize = jnp.dtype(x.dtype).itemsize
    in_bytes = x2d.size * x2d.dtype.itemsize + weight.size * weight.dtype.itemsize
    cost = pl.CostEstimate(
        flops=2 * m * ffn_dim * dim,
        transcendentals=0,
        bytes_accessed=in_bytes + m * dim * out_itemsize,
    )

    # Double-buffered input tiles + double-buffered output tile + f32 accumulator,
    # with 2x headroom; clamp to [16 MiB, 32 MiB] (safe on v5e/v6e/v7x).
    itemsize = x2d.dtype.itemsize
    tile_vmem = (
        2 * (tm * tk + tn * tk) * itemsize
        + 2 * tm * tn * out_itemsize
        + tm * tn * 4
    )
    vmem_limit = int(min(max(2 * tile_vmem, 16 * 1024 * 1024), 32 * 1024 * 1024))

    out2d = pl.pallas_call(
        _dense_kernel,
        out_shape=jax.ShapeDtypeStruct((m, dim), x.dtype),
        grid_spec=pltpu.PrefetchScalarGridSpec(
            num_scalar_prefetch=0,
            grid=grid,
            in_specs=[
                pl.BlockSpec((tm, tk), lambda j, i, k: (i, k)),   # activations
                pl.BlockSpec((tn, tk), lambda j, i, k: (j, k)),   # weight (native layout)
            ],
            out_specs=pl.BlockSpec((tm, tn), lambda j, i, k: (i, j)),
            scratch_shapes=[pltpu.VMEM((tm, tn), jnp.float32)],
        ),
        compiler_params=pltpu.CompilerParams(
            dimension_semantics=("parallel", "parallel", "arbitrary"),
            vmem_limit_bytes=vmem_limit,
        ),
        cost_estimate=cost,
    )(x2d, weight)

    return out2d.reshape(*lead_shape, dim)


if __name__ == "__main__":
    # Small shapes implied by the module: Linear(ffn_dim -> dim), no bias.
    batch, seq, ffn_dim, dim = 2, 8, 32, 16

    key = jax.random.PRNGKey(0)
    kx, kw = jax.random.split(key)

    x = jax.random.normal(kx, (batch, seq, ffn_dim), dtype=jnp.float32)
    # Deterministic weight init (PyTorch-style uniform(-1/sqrt(fan_in), 1/sqrt(fan_in)))
    bound = 1.0 / (ffn_dim ** 0.5)
    weight = jax.random.uniform(
        kw, (dim, ffn_dim), dtype=jnp.float32, minval=-bound, maxval=bound
    )

    out = dense4to1(x, weight)
    out = jax.block_until_ready(out)

    # Sanity check against plain JAX reference (y = x @ W.T).
    ref = jnp.einsum("bsf,df->bsd", x, weight)
    assert out.shape == (batch, seq, dim)
    assert jnp.allclose(out, ref, atol=1e-5, rtol=1e-5)

    print("KERNEL_OK")
</pallas_src>

<mosaic_0001>
module attributes {stable_mosaic.version = 11 : i64} {
  func.func @_dense_kernel(%arg0: i32, %arg1: i32, %arg2: i32, %arg3: memref<16x32xf32, #tpu.memory_space<vmem>>, %arg4: memref<16x32xf32, #tpu.memory_space<vmem>>, %arg5: memref<16x16xf32, #tpu.memory_space<vmem>>, %arg6: memref<16x16xf32, #tpu.memory_space<vmem>>) attributes {dimension_semantics = [#tpu.dimension_semantics<parallel>, #tpu.dimension_semantics<parallel>, #tpu.dimension_semantics<arbitrary>], iteration_bounds = array<i64: 1, 1, 1>, scalar_prefetch = 0 : i64, scratch_operands = 1 : i64, tpu.core_type = #tpu.core_type<tc>, window_params = [{transform_indices = @transform_0, window_bounds = array<i64: 16, 32>}, {transform_indices = @transform_1, window_bounds = array<i64: 16, 32>}, {transform_indices = @transform_2, window_bounds = array<i64: 16, 16>}]} {
    %c0_i32 = arith.constant 0 : i32
    %0 = arith.cmpi eq, %arg2, %c0_i32 : i32
    %1 = arith.extui %0 : i1 to i32
    %c0_i32_0 = arith.constant 0 : i32
    %2 = arith.cmpi ne, %1, %c0_i32_0 : i32
    scf.if %2 {
      %cst_10 = arith.constant 0.000000e+00 : f32
      %12 = vector.broadcast %cst_10 : f32 to vector<16x16xf32>
      %c0_11 = arith.constant 0 : index
      %c0_12 = arith.constant 0 : index
      %13 = vector.load %arg6[%c0_11, %c0_12] : memref<16x16xf32, #tpu.memory_space<vmem>>, vector<16x16xf32>
      tpu.vector_store %arg6[%c0_11, %c0_12], %12 {strides = array<i32>} : memref<16x16xf32, #tpu.memory_space<vmem>>, vector<16x16xf32>,
    } else {
    }
    %c0 = arith.constant 0 : index
    %c0_1 = arith.constant 0 : index
    %3 = vector.load %arg6[%c0, %c0_1] : memref<16x16xf32, #tpu.memory_space<vmem>>, vector<16x16xf32>
    %c0_2 = arith.constant 0 : index
    %c0_3 = arith.constant 0 : index
    %4 = vector.load %arg3[%c0_2, %c0_3] : memref<16x32xf32, #tpu.memory_space<vmem>>, vector<16x32xf32>
    %c0_4 = arith.constant 0 : index
    %c0_5 = arith.constant 0 : index
    %5 = vector.load %arg4[%c0_4, %c0_5] : memref<16x32xf32, #tpu.memory_space<vmem>>, vector<16x32xf32>
    %cst = arith.constant dense<0.000000e+00> : vector<16x16xf32>
    %6 = tpu.matmul %4, %5, %cst {dimension_numbers = #tpu.dot_dimension_numbers<[1], [1], [0], [0], [0, 0, 1, 0], [], []>} : vector<16x32xf32>, vector<16x32xf32>, vector<16x16xf32> -> vector<16x16xf32>
    %7 = arith.addf %3, %6 : vector<16x16xf32>
    %c0_6 = arith.constant 0 : index
    %c0_7 = arith.constant 0 : index
    %8 = vector.load %arg6[%c0_6, %c0_7] : memref<16x16xf32, #tpu.memory_space<vmem>>, vector<16x16xf32>
    tpu.vector_store %arg6[%c0_6, %c0_7], %7 {strides = array<i32>} : memref<16x16xf32, #tpu.memory_space<vmem>>, vector<16x16xf32>,
    %c0_i32_8 = arith.constant 0 : i32
    %9 = arith.cmpi eq, %arg2, %c0_i32_8 : i32
    %10 = arith.extui %9 : i1 to i32
    %c0_i32_9 = arith.constant 0 : i32
    %11 = arith.cmpi ne, %10, %c0_i32_9 : i32
    scf.if %11 {
      %c0_10 = arith.constant 0 : index
      %c0_11 = arith.constant 0 : index
      %12 = vector.load %arg6[%c0_10, %c0_11] : memref<16x16xf32, #tpu.memory_space<vmem>>, vector<16x16xf32>
      %c0_12 = arith.constant 0 : index
      %c0_13 = arith.constant 0 : index
      %13 = vector.load %arg5[%c0_12, %c0_13] : memref<16x16xf32, #tpu.memory_space<vmem>>, vector<16x16xf32>
      tpu.vector_store %arg5[%c0_12, %c0_13], %12 {strides = array<i32>} : memref<16x16xf32, #tpu.memory_space<vmem>>, vector<16x16xf32>,
    } else {
    }
    return
  }
  func.func @transform_0(%arg0: i32, %arg1: i32, %arg2: i32) -> (i32, i32) {
    %c0_i32 = arith.constant 0 : i32
    return %arg1, %arg2 : i32, i32
  }
  func.func @transform_1(%arg0: i32, %arg1: i32, %arg2: i32) -> (i32, i32) {
    %c0_i32 = arith.constant 0 : i32
    return %arg0, %arg2 : i32, i32
  }
  func.func @transform_2(%arg0: i32, %arg1: i32, %arg2: i32) -> (i32, i32) {
    %c0_i32 = arith.constant 0 : i32
    return %arg1, %arg0 : i32, i32
  }
}

</mosaic_0001>

<bundles_post_ra>
// kernel: tpu_custom_call.1
= control target key start
LH: loop header
LB: loop body
LE: loop exit
PB: predicated region body
PF: predicated region fallthrough
CT: control target
= control target key end

     0   :  { %7 = vsyncpa [#allocation4], 0  ;;  %s303_s0 = inlined_call_operand.hbm [shape: f32[16,32], index: 0, kind: input, shape index: {}]   ;;  %s304_s1 = inlined_call_operand.hbm [shape: f32[16,32], index: 1, kind: input, shape index: {}]   ;;  %s305_s2 = inlined_call_operand.hbm [shape: f32[16,16], index: 2, kind: output, shape index: {}]  }
   0x1   :  { %8 = vsyncpa [#allocation7], 0 }
   0x2   :  { %9 = vsyncpa [#allocation5], 0  ;;  %s258_s9 = smov [#allocation3]  }
   0x3   :  { %s15_s10 = sshll.u32 %s258_s9, 4  ;;  %s16_s10 = int_to_ptr.vmem [resolvable:$true] %s15_s10 }
   0x4   :  { %s200_s11 = scalar_lea.vmem %s16_s10, 256  ;;  %p205_p1 = scmp.lt.s32.totalorder %s16_s10, %s16_s10 }
   0x5   :  { %p201_p0 = scmp.ne.s32.totalorder %s16_s10, %s200_s11  ;;  %p206_p2 = scmp.lt.s32.totalorder %s200_s11, %s200_s11 }
   0x7   :  { %p207_p3 = por %p206_p2, %p205_p1 }
   0x9   :  { %p208_p4 = pnand %p207_p3, %p201_p0 }
   0xb   :  { %211 = shalt.err (!%p208_p4)
}
   0xc   :  { %s259_s12 = smov 128   ;;  %s260_s13 = smov 8  }
   0xd   :  { %21 = dma.hbm_to_vmem [thread:$0]  %s303_s0, 256, %s16_s10, [#allocation4], %s259_s12, %s259_s12, %s260_s13  }
   0xe   :  { %s261_s16 = smov [#allocation6]  }
   0xf   :  { %s27_s17 = sshll.u32 %s261_s16, 4  ;;  %s28_s17 = int_to_ptr.vmem [resolvable:$true] %s27_s17 }
  0x10   :  { %s220_s18 = scalar_lea.vmem %s28_s17, 256  ;;  %p225_p6 = scmp.lt.s32.totalorder %s28_s17, %s28_s17 }
  0x11   :  { %p221_p5 = scmp.ne.s32.totalorder %s28_s17, %s220_s18  ;;  %p226_p7 = scmp.lt.s32.totalorder %s220_s18, %s220_s18 }
  0x13   :  { %p227_p8 = por %p226_p7, %p225_p6 }
  0x15   :  { %p228_p9 = pnand %p227_p8, %p221_p5 }
  0x17   :  { %231 = shalt.err (!%p228_p9)
}
  0x18   :  { %33 = dma.hbm_to_vmem [thread:$0]  %s304_s1, 256, %s28_s17, [#allocation7], %s259_s12, %s259_s12, %s260_s13  }
  0x19   :  { %252 = dma.done.wait [#allocation4], 256  }
  0x1a   :  { %253 = vsyncadd [#allocation4], 4294967040 }
  0x1b   :  { %254 = dma.done.wait [#allocation7], 256  }
  0x1c   :  { %255 = vsyncadd [#allocation7], 4294967040  ;;  %vm44_vm0 = vcmask 130048   ;;  %v262_v0 = vmov 0.0   ;;  %vm53_vm1 = vcmask 261120   ;;  %v52_v1 = vld [vmem:[#allocation6 + $0x8] sm:$0xff] }
  0x1d   :  { %46 = vst.msk [vmem:[#allocation2 + $0x8] sm:$0xff] %vm44_vm0, %v262_v0  ;;  %45 = vst.msk [vmem:[#allocation2] sm:$0xff] %vm44_vm0, %v262_v0  ;;  %v51_v2 = vld [vmem:[#allocation6] sm:$0xff]  ;;  %v49_v3 = vld [vmem:[#allocation3] sm:$0xff]  ;;  %179 = vmatprep.subr.msk.mxu0 %vm53_vm1, %v52_v1  ;;  %s263_s0 = smov [#allocation8]  }
  0x1e   :  { %183 = vmatprep.mubr.msk.f32.mxu0 %vm53_vm1, %v49_v3  ;;  %180 = vmatpush3.xpose.msk.msra.mxu0 %vm53_vm1, %v52_v1  ;;  %v50_v4 = vld [vmem:[#allocation3 + $0x8] sm:$0xff]  ;;  %s158_s1 = sshll.u32 %s263_s0, 4  ;;  %s159_s1 = int_to_ptr.vmem [resolvable:$true] %s158_s1 }
  0x1f   :  { %181 = vmatprep.subr.msk.mxu0 %vm53_vm1, %v51_v2  ;;  %s232_s21 = scalar_lea.vmem %s159_s1, 256  ;;  %p237_p11 = scmp.lt.s32.totalorder %s159_s1, %s159_s1 }
  0x20   :  { %p233_p10 = scmp.ne.s32.totalorder %s159_s1, %s232_s21  ;;  %p238_p12 = scmp.lt.s32.totalorder %s232_s21, %s232_s21 }
  0x22   :  { %182 = vmatpush3.xpose.msk.msra.mxu0 %vm53_vm1, %v51_v2  ;;  %p239_p13 = por %p238_p12, %p237_p11 }
  0x24   :  { %v48_v5 = vld [vmem:[#allocation2 + $0x8] sm:$0xff]  ;;  %v47_v7 = vld [vmem:[#allocation2] sm:$0xff]  ;;  %p240_p0 = pnand %p239_p13, %p233_p10 }
  0x25   :  { %184 = vmatmul.mubr.msk.f32.vlgmr.msra.gmra.mxu0 %vm53_vm1, %v50_v4 }
  0xe5   :  { %v185_v6 = vpop.f32.mrf.mxu0 }
  0xe6   :  { %v142_v8 = vadd.f32 %v185_v6, %v48_v5 }
  0xe7   :  { %v132_v9 = vpop.f32.mrf.mxu0 }
  0xe8   :  { %145 = vst.msk [vmem:[#allocation2 + $0x8] sm:$0xff] %vm44_vm0, %v142_v8  ;;  %v141_v10 = vadd.f32 %v132_v9, %v47_v7 }
  0xea   :  { %144 = vst.msk [vmem:[#allocation2] sm:$0xff] %vm44_vm0, %v141_v10 }
  0xef   :  { %v150_v11 = vld [vmem:[#allocation2 + $0x8] sm:$0xff] }
  0xf0   :  { %152 = vst.msk [vmem:[#allocation8 + $0x8] sm:$0xff] %vm44_vm0, %v150_v11 }
  0xf1   :  { %v149_v12 = vld [vmem:[#allocation2] sm:$0xff] }
  0xf2   :  { %151 = vst.msk [vmem:[#allocation8] sm:$0xff] %vm44_vm0, %v149_v12 }
  0xf3   :  { %243 = shalt.err (!%p240_p0)
}
  0xf4   :  { %164 = dma.vmem_to_hbm [thread:$0]  %s159_s1, 256, %s305_s2, [#allocation5], %s259_s12, %s259_s12, %s260_s13  }
  0xf5   :  { %256 = dma.done.wait [#allocation5], 256  }
  0xf6   :  { %257 = vsyncadd [#allocation5], 4294967040 }
  0xf7   :  { %168 = vsyncpa [#allocation4], 1 }
  0xf8   :  { %169 = vsyncpa [#allocation7], 1 }
  0xf9   :  { %170 = vsyncpa [#allocation5], 1 }

</bundles_post_ra>
